<compile_context>
chip_gen: v5e
topology: v5e:2x2
jax: 0.10.0
libtpu: 0.0.40
codegen_flags: <defaults>
</compile_context>

<pallas_src>
import jax
import jax.numpy as jnp
from jax.experimental import pallas as pl
from jax.experimental.pallas import tpu as pltpu

LANES = 128      # vreg lane width (last dim)
SUBLANES = 8     # vreg sublane height for f32 (second-to-last dim)


def _bce_kernel(x_ref, t_ref, out_ref):
    """Accumulate per-(sublane, lane) partial sums of the clamped BCE."""
    s = pl.program_id(1)  # reduction ("arbitrary") axis

    @pl.when(s == 0)
    def _():
        out_ref[...] = jnp.zeros_like(out_ref)

    x = x_ref[...].astype(jnp.float32)
    t = t_ref[...].astype(jnp.float32)

    # PyTorch clamps each log term at -100; clamping before combining also
    # avoids 0 * (-inf) = NaN at x == 0 or x == 1.
    log_p = jnp.maximum(jnp.log(x), -100.0)
    log_1mp = jnp.maximum(jnp.log(1.0 - x), -100.0)
    # Factored form of -(t*log_p + (1-t)*log_1mp): one fewer mul/sub per elem.
    bce = -(t * (log_p - log_1mp) + log_1mp)

    # Fold the (tm, 128) tile into the (8, 128) accumulator with VPU adds only;
    # the single cross-lane/sublane reduction happens once, in the wrapper.
    out_ref[...] += jnp.sum(bce.reshape(-1, SUBLANES, LANES), axis=0)


def _bce_sum_flat(x, t):
    """Plain-JAX clamped BCE sum (used only for the small ragged tail)."""
    x = x.astype(jnp.float32)
    t = t.astype(jnp.float32)
    log_p = jnp.maximum(jnp.log(x), -100.0)
    log_1mp = jnp.maximum(jnp.log(1.0 - x), -100.0)
    return jnp.sum(-(t * (log_p - log_1mp) + log_1mp))


def bce_loss(inputs, targets, *, tm=1024):
    """Mean binary cross entropy over all elements (reduction='mean')."""
    assert inputs.shape == targets.shape
    n_valid = int(inputs.size)

    # Flatten in the input's native dtype; the kernel upcasts on-chip.
    x = inputs.reshape(-1)
    t = targets.reshape(-1)

    rows = n_valid // LANES
    if rows < SUBLANES:
        # Too small for even one (8, 128) tile -- not worth a kernel launch.
        return _bce_sum_flat(x, t) / jnp.float32(n_valid)

    # Tile rows: as large as requested, no larger than the data, multiple of 8.
    tm_eff = min(tm, (rows // SUBLANES) * SUBLANES)
    n_blocks = rows // tm_eff

    # Leading parallel axis: feeds both TensorCores on v7x megacore; each
    # parallel chunk keeps its own (8, 128) partial-sum slab.
    n_par = 2 if n_blocks >= 2 else 1
    steps = n_blocks // n_par
    rows_main = n_par * steps * tm_eff
    n_main = rows_main * LANES

    # 128-aligned prefix goes to the kernel. When n_valid is a multiple of
    # 128 (the common case) this reshape is free -- no pad/concatenate copy.
    n_aligned = rows * LANES
    if n_aligned == n_valid:
        x2 = x.reshape(rows, LANES)
        t2 = t.reshape(rows, LANES)
    else:
        x2 = x[:n_aligned].reshape(rows, LANES)
        t2 = t[:n_aligned].reshape(rows, LANES)

    in_spec = pl.BlockSpec((tm_eff, LANES), lambda p, s: (p * steps + s, 0))
    out_spec = pl.BlockSpec((SUBLANES, LANES), lambda p, s: (p, 0))

    partial = pl.pallas_call(
        _bce_kernel,
        out_shape=jax.ShapeDtypeStruct((n_par * SUBLANES, LANES), jnp.float32),
        grid_spec=pltpu.PrefetchScalarGridSpec(
            num_scalar_prefetch=0,
            grid=(n_par, steps),
            in_specs=[in_spec, in_spec],
            out_specs=out_spec,
        ),
        compiler_params=pltpu.CompilerParams(
            dimension_semantics=("parallel", "arbitrary"),
        ),
    )(x2, t2)

    total = jnp.sum(partial)
    if n_main < n_valid:
        # Ragged remainder not covered by the grid: trivial JAX tail sum.
        total = total + _bce_sum_flat(x[n_main:], t[n_main:])

    return total / jnp.float32(n_valid)


if __name__ == "__main__":
    key = jax.random.PRNGKey(0)
    k1, k2 = jax.random.split(key)

    # Segmentation-style BCE shapes: (B, C, H, W), probabilities in (0, 1).
    B, C, H, W = 2, 4, 16, 16
    inputs = jax.nn.sigmoid(jax.random.normal(k1, (B, C, H, W), jnp.float32))
    targets = (jax.random.uniform(k2, (B, C, H, W)) > 0.5).astype(jnp.float32)

    loss = bce_loss(inputs, targets)
    jax.block_until_ready(loss)

    # Reference check in plain JAX (same clamping as PyTorch BCELoss).
    log_p = jnp.maximum(jnp.log(inputs), -100.0)
    log_1mp = jnp.maximum(jnp.log(1.0 - inputs), -100.0)
    ref = jnp.mean(-(targets * log_p + (1.0 - targets) * log_1mp))
    assert jnp.allclose(loss, ref, atol=1e-5, rtol=1e-5), (loss, ref)

    print("KERNEL_OK")
</pallas_src>

<mosaic_0001>
module attributes {stable_mosaic.version = 11 : i64} {
  func.func @_bce_kernel(%arg0: i32, %arg1: i32, %arg2: memref<16x128xf32, #tpu.memory_space<vmem>>, %arg3: memref<16x128xf32, #tpu.memory_space<vmem>>, %arg4: memref<8x128xf32, #tpu.memory_space<vmem>>) attributes {dimension_semantics = [#tpu.dimension_semantics<parallel>, #tpu.dimension_semantics<arbitrary>], iteration_bounds = array<i64: 1, 1>, scalar_prefetch = 0 : i64, scratch_operands = 0 : i64, tpu.core_type = #tpu.core_type<tc>, window_params = [{transform_indices = @transform_0, window_bounds = array<i64: 16, 128>}, {transform_indices = @transform_1, window_bounds = array<i64: 16, 128>}, {transform_indices = @transform_2, window_bounds = array<i64: 8, 128>}]} {
    %c0_i32 = arith.constant 0 : i32
    %0 = arith.cmpi eq, %arg1, %c0_i32 : i32
    %1 = arith.extui %0 : i1 to i32
    %c0_i32_0 = arith.constant 0 : i32
    %2 = arith.cmpi ne, %1, %c0_i32_0 : i32
    scf.if %2 {
      %cst_12 = arith.constant 0.000000e+00 : f32
      %23 = vector.broadcast %cst_12 : f32 to vector<8x128xf32>
      %c0_13 = arith.constant 0 : index
      %c0_14 = arith.constant 0 : index
      %24 = vector.load %arg4[%c0_13, %c0_14] : memref<8x128xf32, #tpu.memory_space<vmem>>, vector<8x128xf32>
      tpu.vector_store %arg4[%c0_13, %c0_14], %23 {strides = array<i32>} : memref<8x128xf32, #tpu.memory_space<vmem>>, vector<8x128xf32>,
    } else {
    }
    %c0 = arith.constant 0 : index
    %c0_1 = arith.constant 0 : index
    %3 = vector.load %arg2[%c0, %c0_1] : memref<16x128xf32, #tpu.memory_space<vmem>>, vector<16x128xf32>
    %c0_2 = arith.constant 0 : index
    %c0_3 = arith.constant 0 : index
    %4 = vector.load %arg3[%c0_2, %c0_3] : memref<16x128xf32, #tpu.memory_space<vmem>>, vector<16x128xf32>
    %5 = math.log %3 : vector<16x128xf32>
    %cst = arith.constant -1.000000e+02 : f32
    %6 = vector.broadcast %cst : f32 to vector<16x128xf32>
    %7 = arith.maximumf %5, %6 : vector<16x128xf32>
    %cst_4 = arith.constant 1.000000e+00 : f32
    %8 = vector.broadcast %cst_4 : f32 to vector<16x128xf32>
    %9 = arith.subf %8, %3 : vector<16x128xf32>
    %10 = math.log %9 : vector<16x128xf32>
    %cst_5 = arith.constant -1.000000e+02 : f32
    %11 = vector.broadcast %cst_5 : f32 to vector<16x128xf32>
    %12 = arith.maximumf %10, %11 : vector<16x128xf32>
    %13 = arith.subf %7, %12 : vector<16x128xf32>
    %14 = arith.mulf %4, %13 : vector<16x128xf32>
    %15 = arith.addf %14, %12 : vector<16x128xf32>
    %cst_6 = arith.constant 0.000000e+00 : f32
    %16 = vector.broadcast %cst_6 : f32 to vector<16x128xf32>
    %17 = arith.subf %16, %15 : vector<16x128xf32>
    %c0_7 = arith.constant 0 : index
    %c0_8 = arith.constant 0 : index
    %18 = vector.load %arg4[%c0_7, %c0_8] : memref<8x128xf32, #tpu.memory_space<vmem>>, vector<8x128xf32>
    %19 = vector.shape_cast %17 : vector<16x128xf32> to vector<2x8x128xf32>
    %cst_9 = arith.constant dense<0.000000e+00> : vector<8x128xf32>
    %20 = vector.multi_reduction <add>, %19, %cst_9 [0] : vector<2x8x128xf32> to vector<8x128xf32>
    %21 = arith.addf %18, %20 : vector<8x128xf32>
    %c0_10 = arith.constant 0 : index
    %c0_11 = arith.constant 0 : index
    %22 = vector.load %arg4[%c0_10, %c0_11] : memref<8x128xf32, #tpu.memory_space<vmem>>, vector<8x128xf32>
    tpu.vector_store %arg4[%c0_10, %c0_11], %21 {strides = array<i32>} : memref<8x128xf32, #tpu.memory_space<vmem>>, vector<8x128xf32>,
    return
  }
  func.func @transform_0(%arg0: i32, %arg1: i32) -> (i32, i32) {
    %c1_i32 = arith.constant 1 : i32
    %0 = arith.muli %arg0, %c1_i32 : i32
    %1 = arith.addi %0, %arg1 : i32
    %c0_i32 = arith.constant 0 : i32
    %c0_i32_0 = arith.constant 0 : i32
    return %1, %c0_i32 : i32, i32
  }
  func.func @transform_1(%arg0: i32, %arg1: i32) -> (i32, i32) {
    %c1_i32 = arith.constant 1 : i32
    %0 = arith.muli %arg0, %c1_i32 : i32
    %1 = arith.addi %0, %arg1 : i32
    %c0_i32 = arith.constant 0 : i32
    %c0_i32_0 = arith.constant 0 : i32
    return %1, %c0_i32 : i32, i32
  }
  func.func @transform_2(%arg0: i32, %arg1: i32) -> (i32, i32) {
    %c0_i32 = arith.constant 0 : i32
    %c0_i32_0 = arith.constant 0 : i32
    return %arg0, %c0_i32 : i32, i32
  }
}

</mosaic_0001>

<bundles_post_ra>
// kernel: tpu_custom_call.1
= control target key start
LH: loop header
LB: loop body
LE: loop exit
PB: predicated region body
PF: predicated region fallthrough
CT: control target
= control target key end

     0   :  { %7 = vsyncpa [#allocation3], 0  ;;  %s230_s0 = inlined_call_operand.hbm [shape: f32[16,128], index: 0, kind: input, shape index: {}]   ;;  %s231_s1 = inlined_call_operand.hbm [shape: f32[16,128], index: 1, kind: input, shape index: {}]   ;;  %s232_s2 = inlined_call_operand.hbm [shape: f32[8,128], index: 2, kind: output, shape index: {}]  }
   0x1   :  { %8 = vsyncpa [#allocation6], 0 }
   0x2   :  { %9 = vsyncpa [#allocation4], 0  ;;  %s18_s11 = sshll.u32 %s230_s0, 4  ;;  %s201_s12 = smov [#allocation2]   ;;  %s19_s11 = int_to_ptr.hbm [resolvable:$true] %s18_s11 }
   0x3   :  { %s20_s13 = sshll.u32 %s201_s12, 4  ;;  %s35_s16 = sshll.u32 %s231_s1, 4  ;;  %s21_s13 = int_to_ptr.vmem [resolvable:$true] %s20_s13  ;;  %s36_s16 = int_to_ptr.hbm [resolvable:$true] %s35_s16 }
   0x4   :  { %s202_s17 = smov 128   ;;  %s203_s18 = smov 8  }
   0x5   :  { %26 = dma.hbm_to_vmem [thread:$0]  %s19_s11, 256, %s21_s13, [#allocation3], %s202_s17, %s202_s17, %s203_s18  }
   0x6   :  { %s204_s19 = smov [#allocation5]  }
   0x7   :  { %s37_s20 = sshll.u32 %s204_s19, 4  ;;  %s38_s20 = int_to_ptr.vmem [resolvable:$true] %s37_s20 }
   0x8   :  { %43 = dma.hbm_to_vmem [thread:$0]  %s36_s16, 256, %s38_s20, [#allocation6], %s202_s17, %s202_s17, %s203_s18  }
   0x9   :  { %195 = dma.done.wait [#allocation3], 256  }
   0xa   :  { %196 = vsyncadd [#allocation3], 4294967040 }
   0xb   :  { %197 = dma.done.wait [#allocation6], 256  }
   0xc   :  { %198 = vsyncadd [#allocation6], 4294967040  ;;  %v61_v0 = vld [vmem:[#allocation2] sm:$0xff]  ;;  %v62_v1 = vld [vmem:[#allocation2 + $0x8] sm:$0xff]  ;;  %s205_s0 = smov [#allocation7]   ;;  %s98_s23 = sshll.u32 %s232_s2, 4  ;;  %s99_s23 = int_to_ptr.hbm [resolvable:$true] %s98_s23 }
   0xd   :  { %115 = vlog2.f32 %v61_v0  ;;  %v71_v2 = vsub.f32 1.0, %v61_v0  ;;  %v72_v3 = vsub.f32 1.0, %v62_v1  ;;  %v63_v15 = vld [vmem:[#allocation5] sm:$0xff]  ;;  %v64_v17 = vld [vmem:[#allocation5 + $0x8] sm:$0xff]  ;;  %s96_s1 = sshll.u32 %s205_s0, 4  ;;  %s97_s1 = int_to_ptr.vmem [resolvable:$true] %s96_s1 }
   0xe   :  { %117 = vlog2.f32 %v62_v1 }
   0xf   :  { %119 = vlog2.f32 %v71_v2 }
  0x10   :  { %121 = vlog2.f32 %v72_v3 }
  0x13   :  { %v116_v4 = vpop.eup %115 }
  0x14   :  { %v118_v5 = vpop.eup %117  ;;  %v66_v6 = vmul.f32 0.6931472, %v116_v4 }
  0x15   :  { %v120_v7 = vpop.eup %119  ;;  %v68_v8 = vmul.f32 0.6931472, %v118_v5 }
  0x16   :  { %v122_v9 = vpop.eup %121  ;;  %v69_v10 = vmax.f32 %v66_v6, -100.0  ;;  %v74_v11 = vmul.f32 0.6931472, %v120_v7 }
  0x17   :  { %v70_v12 = vmax.f32 %v68_v8, -100.0  ;;  %v76_v13 = vmul.f32 0.6931472, %v122_v9 }
  0x18   :  { %v77_v14 = vmax.f32 %v74_v11, -100.0 }
  0x19   :  { %v78_v16 = vmax.f32 %v76_v13, -100.0 }
  0x1a   :  { %v79_v18 = vsub.f32 %v69_v10, %v77_v14 }
  0x1b   :  { %v80_v19 = vsub.f32 %v70_v12, %v78_v16 }
  0x1c   :  { %v81_v20 = vmul.f32 %v79_v18, %v63_v15 }
  0x1d   :  { %v82_v21 = vmul.f32 %v80_v19, %v64_v17 }
  0x1e   :  { %v83_v22 = vadd.f32 %v81_v20, %v77_v14 }
  0x1f   :  { %v84_v23 = vadd.f32 %v82_v21, %v78_v16 }
  0x20   :  { %v85_v24 = vsub.f32 0.0, %v83_v22 }
  0x21   :  { %v86_v25 = vsub.f32 0.0, %v84_v23 }
  0x23   :  { %v88_v26 = vadd.f32 %v86_v25, %v85_v24 }
  0x25   :  { %90 = vst [vmem:[#allocation7] sm:$0xff] %v88_v26 }
  0x26   :  { %101 = dma.vmem_to_hbm [thread:$0]  %s97_s1, 128, %s99_s23, [#allocation4]  }
  0x27   :  { %199 = dma.done.wait [#allocation4], 128  }
  0x28   :  { %200 = vsyncadd [#allocation4], 4294967168 }
  0x29   :  { %106 = vsyncpa [#allocation3], 1 }
  0x2a   :  { %107 = vsyncpa [#allocation6], 1 }
  0x2b   :  { %108 = vsyncpa [#allocation4], 1 }

</bundles_post_ra>
